<compile_context>
chip_gen: v6e
topology: v6e:2x2x1
jax: 0.10.0
libtpu: 0.0.40
codegen_flags: <defaults>
</compile_context>

<pallas_src>
import functools

import jax
import jax.numpy as jnp
from jax import lax
from jax.experimental import pallas as pl
from jax.experimental.pallas import tpu as pltpu

MARGIN = 1.0  # nn.TripletMarginWithDistanceLoss default


def _round_up(x: int, m: int) -> int:
    return (x + m - 1) // m * m


def _pick_row_tile(b: int, max_tb: int, sublane: int):
    """Row tile for both the anchor-row (i) and candidate-row (j) axes."""
    if b <= 128:
        tb = _round_up(b, sublane)
        return tb, tb
    best = None
    for c in range(128, max_tb + 1, 128):
        bp = _round_up(b, c)
        gi = bp // c
        # 1) minimize padded size, 2) prefer >= 2 row tiles (keeps both v7x
        #    TensorCores busy on the "parallel" i axis), 3) prefer bigger tiles.
        key = (bp, 0 if gi >= 2 else 1, -c)
        if best is None or key < best[0]:
            best = (key, c, bp)
    return best[1], best[2]


def _pick_col_tile(d: int, max_tk: int):
    """Feature-dim tile; prefer a single block (no VMEM accumulator needed)."""
    dp128 = _round_up(d, 128)
    if dp128 <= max_tk:
        return dp128, dp128
    best = None
    for c in range(128, max_tk + 1, 128):
        dp = _round_up(d, c)
        key = (dp, -c)
        if best is None or key < best[0]:
            best = (key, c, dp)
    return best[1], best[2]


def _kernel_single_k(q_ref, d_ref, out_ref, *, margin):
    """grid = (i, j).  Whole feature dim in one block: no accumulator RMW."""
    j = pl.program_id(1)

    @pl.when(j == 0)
    def _():
        out_ref[...] = jnp.zeros_like(out_ref)

    # One MXU matmul per tile: q @ diff.T with f32 accumulation.
    s = lax.dot_general(q_ref[...], d_ref[...],
                        (((1,), (1,)), ((), ())),
                        preferred_element_type=jnp.float32)      # (tm, tn)
    hinge = jnp.maximum(s + margin, 0.0)
    out_ref[...] += jnp.sum(hinge, axis=1, keepdims=True)        # (tm, 1)


def _kernel_multi_k(q_ref, d_ref, out_ref, acc_ref, *, margin):
    """grid = (i, j, k).  f32 VMEM accumulator over the feature (k) axis."""
    j = pl.program_id(1)
    k = pl.program_id(2)
    nk = pl.num_programs(2)

    @pl.when(k == 0)
    def _():
        acc_ref[...] = jnp.zeros_like(acc_ref)

    @pl.when((j == 0) & (k == 0))
    def _():
        out_ref[...] = jnp.zeros_like(out_ref)

    acc_ref[...] += lax.dot_general(q_ref[...], d_ref[...],
                                    (((1,), (1,)), ((), ())),
                                    preferred_element_type=jnp.float32)

    # Hinge + row reduction only after the full feature reduction.
    @pl.when(k == nk - 1)
    def _():
        hinge = jnp.maximum(acc_ref[...] + margin, 0.0)
        out_ref[...] += jnp.sum(hinge, axis=1, keepdims=True)


def triplet_contrastive_with_dot_loss(x_q, x_pos, x_neg, *, margin=MARGIN,
                                      max_tile_b=1024, max_tile_k=1024):
    """Float32 scalar loss matching the PyTorch module's forward."""
    assert x_q.shape == x_pos.shape == x_neg.shape and x_q.ndim == 2
    B, D = x_q.shape

    # The "distance" q @ y.T is linear in y, so the hinge argument is exactly
    # q @ (pos - neg).T.  Precomputing diff once in XLA removes an entire
    # streamed operand (pos/neg would otherwise each be re-read gi times) and
    # the per-tile subtract.  Exact for f32; for bf16 inputs the subtract
    # happens in bf16 before the matmul (acceptable deviation, see notes).
    diff = x_pos - x_neg

    sublane = 16 if x_q.dtype == jnp.bfloat16 else 8
    tb, Bp = _pick_row_tile(B, max_tile_b, sublane)
    tk, Dp = _pick_col_tile(D, max_tile_k)

    if (Bp, Dp) != (B, D):
        pad = ((0, Bp - B), (0, Dp - D))
        x_q = jnp.pad(x_q, pad)
        diff = jnp.pad(diff, pad)

    gi = gj = Bp // tb
    gk = Dp // tk

    # 48 MiB scoped VMEM: above the 16/32 MiB defaults (needed for big tiles
    # on v5e/v6e), still inside v7x's 64 MiB-per-TC physical budget.
    vmem_limit = 48 << 20

    if gk == 1:
        row_sums = pl.pallas_call(
            functools.partial(_kernel_single_k, margin=float(margin)),
            out_shape=jax.ShapeDtypeStruct((Bp, 1), jnp.float32),
            grid_spec=pltpu.PrefetchScalarGridSpec(
                num_scalar_prefetch=0,
                grid=(gi, gj),
                in_specs=[
                    pl.BlockSpec((tb, tk), lambda i, j: (i, 0)),   # q rows
                    pl.BlockSpec((tb, tk), lambda i, j: (j, 0)),   # diff rows
                ],
                out_specs=pl.BlockSpec((tb, 1), lambda i, j: (i, 0)),
            ),
            compiler_params=pltpu.CompilerParams(
                dimension_semantics=("parallel", "arbitrary"),
                vmem_limit_bytes=vmem_limit),
        )(x_q, diff)
    else:
        row_sums = pl.pallas_call(
            functools.partial(_kernel_multi_k, margin=float(margin)),
            out_shape=jax.ShapeDtypeStruct((Bp, 1), jnp.float32),
            grid_spec=pltpu.PrefetchScalarGridSpec(
                num_scalar_prefetch=0,
                grid=(gi, gj, gk),
                in_specs=[
                    pl.BlockSpec((tb, tk), lambda i, j, k: (i, k)),  # q tile
                    pl.BlockSpec((tb, tk), lambda i, j, k: (j, k)),  # diff tile
                ],
                out_specs=pl.BlockSpec((tb, 1), lambda i, j, k: (i, 0)),
                scratch_shapes=[pltpu.VMEM((tb, tb), jnp.float32)],
            ),
            compiler_params=pltpu.CompilerParams(
                dimension_semantics=("parallel", "arbitrary", "arbitrary"),
                vmem_limit_bytes=vmem_limit),
        )(x_q, diff)

    total = jnp.sum(row_sums)
    # Padded rows/cols are exactly zero, so every padded (anchor, candidate)
    # pair contributes exactly max(margin, 0).  Correct analytically instead
    # of masking inside the hot epilogue.
    pad_pairs = Bp * Bp - B * B
    if pad_pairs:
        total = total - jnp.float32(pad_pairs * max(float(margin), 0.0))
    return total * jnp.float32(1.0 / float(B * B))


def _reference(x_q, x_pos, x_neg, margin=MARGIN):
    hi = lax.Precision.HIGHEST
    s_pos = jnp.matmul(x_q, x_pos.T, precision=hi)
    s_neg = jnp.matmul(x_q, x_neg.T, precision=hi)
    return jnp.mean(jnp.maximum(s_pos - s_neg + margin, 0.0))


if __name__ == "__main__":
    key = jax.random.PRNGKey(0)
    kq, kp, kn = jax.random.split(key, 3)

    # Small shape consistent with the module (batch of D-dim embeddings).
    B, D = 8, 32
    x_q = jax.random.normal(kq, (B, D), dtype=jnp.float32)
    x_pos = jax.random.normal(kp, (B, D), dtype=jnp.float32)
    x_neg = jax.random.normal(kn, (B, D), dtype=jnp.float32)

    loss = jax.block_until_ready(
        triplet_contrastive_with_dot_loss(x_q, x_pos, x_neg))
    ref = _reference(x_q, x_pos, x_neg)
    assert jnp.allclose(loss, ref, rtol=1e-4, atol=1e-4), (loss, ref)

    # Ragged shape: exercises padding, the analytic padded-pair correction,
    # the tile picker (tb=128 -> Bp=384, gi=3) and the single-k fast path.
    k2q, k2p, k2n = jax.random.split(jax.random.PRNGKey(1), 3)
    B2, D2 = 300, 640
    y_q = jax.random.normal(k2q, (B2, D2), dtype=jnp.float32)
    y_pos = jax.random.normal(k2p, (B2, D2), dtype=jnp.float32)
    y_neg = jax.random.normal(k2n, (B2, D2), dtype=jnp.float32)

    loss2 = jax.block_until_ready(
        triplet_contrastive_with_dot_loss(y_q, y_pos, y_neg))
    ref2 = _reference(y_q, y_pos, y_neg)
    assert jnp.allclose(loss2, ref2, rtol=1e-4, atol=1e-4), (loss2, ref2)

    # Force a small feature tile to exercise the multi-k accumulator path.
    loss3 = jax.block_until_ready(
        triplet_contrastive_with_dot_loss(y_q, y_pos, y_neg, max_tile_k=256))
    assert jnp.allclose(loss3, ref2, rtol=1e-4, atol=1e-4), (loss3, ref2)

    print("KERNEL_OK")
</pallas_src>

<mosaic_0001>
module attributes {stable_mosaic.version = 11 : i64} {
  func.func @_kernel_single_k(%arg0: i32, %arg1: i32, %arg2: memref<8x128xf32, #tpu.memory_space<vmem>>, %arg3: memref<8x128xf32, #tpu.memory_space<vmem>>, %arg4: memref<8x1xf32, #tpu.memory_space<vmem>>) attributes {dimension_semantics = [#tpu.dimension_semantics<parallel>, #tpu.dimension_semantics<arbitrary>], iteration_bounds = array<i64: 1, 1>, scalar_prefetch = 0 : i64, scratch_operands = 0 : i64, tpu.core_type = #tpu.core_type<tc>, window_params = [{transform_indices = @transform_0, window_bounds = array<i64: 8, 128>}, {transform_indices = @transform_1, window_bounds = array<i64: 8, 128>}, {transform_indices = @transform_2, window_bounds = array<i64: 8, 1>}]} {
    %c0_i32 = arith.constant 0 : i32
    %0 = arith.cmpi eq, %arg1, %c0_i32 : i32
    %1 = arith.extui %0 : i1 to i32
    %c0_i32_0 = arith.constant 0 : i32
    %2 = arith.cmpi ne, %1, %c0_i32_0 : i32
    scf.if %2 {
      %cst_11 = arith.constant 0.000000e+00 : f32
      %15 = vector.broadcast %cst_11 : f32 to vector<8x1xf32>
      %c0_12 = arith.constant 0 : index
      %c0_13 = arith.constant 0 : index
      %16 = vector.load %arg4[%c0_12, %c0_13] : memref<8x1xf32, #tpu.memory_space<vmem>>, vector<8x1xf32>
      tpu.vector_store %arg4[%c0_12, %c0_13], %15 {strides = array<i32>} : memref<8x1xf32, #tpu.memory_space<vmem>>, vector<8x1xf32>,
    } else {
    }
    %c0 = arith.constant 0 : index
    %c0_1 = arith.constant 0 : index
    %3 = vector.load %arg2[%c0, %c0_1] : memref<8x128xf32, #tpu.memory_space<vmem>>, vector<8x128xf32>
    %c0_2 = arith.constant 0 : index
    %c0_3 = arith.constant 0 : index
    %4 = vector.load %arg3[%c0_2, %c0_3] : memref<8x128xf32, #tpu.memory_space<vmem>>, vector<8x128xf32>
    %cst = arith.constant dense<0.000000e+00> : vector<8x8xf32>
    %5 = tpu.matmul %3, %4, %cst {dimension_numbers = #tpu.dot_dimension_numbers<[1], [1], [0], [0], [0, 0, 1, 0], [], []>} : vector<8x128xf32>, vector<8x128xf32>, vector<8x8xf32> -> vector<8x8xf32>
    %cst_4 = arith.constant 1.000000e+00 : f32
    %6 = vector.broadcast %cst_4 : f32 to vector<8x8xf32>
    %7 = arith.addf %5, %6 : vector<8x8xf32>
    %cst_5 = arith.constant 0.000000e+00 : f32
    %8 = vector.broadcast %cst_5 : f32 to vector<8x8xf32>
    %9 = arith.maximumf %7, %8 : vector<8x8xf32>
    %c0_6 = arith.constant 0 : index
    %c0_7 = arith.constant 0 : index
    %10 = vector.load %arg4[%c0_6, %c0_7] : memref<8x1xf32, #tpu.memory_space<vmem>>, vector<8x1xf32>
    %cst_8 = arith.constant dense<0.000000e+00> : vector<8xf32>
    %11 = vector.multi_reduction <add>, %9, %cst_8 [1] : vector<8x8xf32> to vector<8xf32>
    %12 = vector.shape_cast %11 : vector<8xf32> to vector<8x1xf32>
    %13 = arith.addf %10, %12 : vector<8x1xf32>
    %c0_9 = arith.constant 0 : index
    %c0_10 = arith.constant 0 : index
    %14 = vector.load %arg4[%c0_9, %c0_10] : memref<8x1xf32, #tpu.memory_space<vmem>>, vector<8x1xf32>
    tpu.vector_store %arg4[%c0_9, %c0_10], %13 {strides = array<i32>} : memref<8x1xf32, #tpu.memory_space<vmem>>, vector<8x1xf32>,
    return
  }
  func.func @transform_0(%arg0: i32, %arg1: i32) -> (i32, i32) {
    %c0_i32 = arith.constant 0 : i32
    %c0_i32_0 = arith.constant 0 : i32
    return %arg0, %c0_i32 : i32, i32
  }
  func.func @transform_1(%arg0: i32, %arg1: i32) -> (i32, i32) {
    %c0_i32 = arith.constant 0 : i32
    %c0_i32_0 = arith.constant 0 : i32
    return %arg1, %c0_i32 : i32, i32
  }
  func.func @transform_2(%arg0: i32, %arg1: i32) -> (i32, i32) {
    %c0_i32 = arith.constant 0 : i32
    %c0_i32_0 = arith.constant 0 : i32
    return %arg0, %c0_i32 : i32, i32
  }
}

</mosaic_0001>

<bundles_post_ra>
// kernel: tpu_custom_call.1
= control target key start
LH: loop header
LB: loop body
LE: loop exit
PB: predicated region body
PF: predicated region fallthrough
CT: control target
= control target key end

     0   :  { %7 = vsyncpa [#allocation3], 0  ;;  %s219_s0 = inlined_call_operand.hbm [shape: f32[8,128], index: 0, kind: input, shape index: {}]   ;;  %s220_s1 = inlined_call_operand.hbm [shape: f32[8,128], index: 1, kind: input, shape index: {}]   ;;  %s221_s2 = inlined_call_operand.vmem [shape: f32[8,1], index: 2, kind: output, shape index: {}]  }
   0x1   :  { %8 = vsyncpa [#allocation5], 0  ;;  %s183_s9 = smov [#allocation2]   ;;  %s184_s11 = smov [#allocation4]  }
   0x2   :  { %s15_s10 = sshll.u32 %s183_s9, 4  ;;  %s25_s12 = sshll.u32 %s184_s11, 4  ;;  %s16_s10 = int_to_ptr.vmem [resolvable:$true] %s15_s10  ;;  %s26_s12 = int_to_ptr.vmem [resolvable:$true] %s25_s12 }
   0x3   :  { %s147_s13 = scalar_lea.vmem %s16_s10, 128  ;;  %p152_p1 = scmp.lt.s32.totalorder %s16_s10, %s16_s10 }
   0x4   :  { %p148_p0 = scmp.ne.s32.totalorder %s16_s10, %s147_s13  ;;  %p153_p2 = scmp.lt.s32.totalorder %s147_s13, %s147_s13 }
   0x6   :  { %p154_p3 = por %p153_p2, %p152_p1 }
   0x8   :  { %p155_p4 = pnand %p154_p3, %p148_p0 }
   0xa   :  { %158 = shalt.err (!%p155_p4)
}
   0xb   :  { %18 = dma.hbm_to_vmem [thread:$0]  %s219_s0, 128, %s16_s10, [#allocation3]  }
   0xc   :  { %s167_s16 = scalar_lea.vmem %s26_s12, 128  ;;  %p172_p6 = scmp.lt.s32.totalorder %s26_s12, %s26_s12 }
   0xd   :  { %p168_p5 = scmp.ne.s32.totalorder %s26_s12, %s167_s16  ;;  %p173_p7 = scmp.lt.s32.totalorder %s167_s16, %s167_s16 }
   0xf   :  { %p174_p8 = por %p173_p7, %p172_p6 }
  0x11   :  { %p175_p9 = pnand %p174_p8, %p168_p5 }
  0x13   :  { %178 = shalt.err (!%p175_p9)
}
  0x14   :  { %28 = dma.hbm_to_vmem [thread:$0]  %s220_s1, 128, %s26_s12, [#allocation5]  }
  0x15   :  { %179 = dma.done.wait [#allocation3], 128  }
  0x16   :  { %180 = vsyncadd [#allocation3], 4294967168 }
  0x17   :  { %181 = dma.done.wait [#allocation5], 128  }
  0x18   :  { %182 = vsyncadd [#allocation5], 4294967168  ;;  %vm39_vm0 = vcmask 7168   ;;  %v185_v0 = vmov 0.0   ;;  %vm186_vm1 = vmmov 0   ;;  %v42_v1 = vld [vmem:[#allocation4] sm:$0xff] }
  0x19   :  { %40 = vst.msk [vmem:[%s221_s2] sm:$0xff] %vm39_vm0, %v185_v0  ;;  %130 = vmatprep.subr.mxu0 %v185_v0  ;;  %132 = vmatprep.mubr.msk.f32.mxu0 %vm186_vm1, %v185_v0  ;;  %v41_v2 = vld [vmem:[#allocation2] sm:$0xff]  ;;  %vm115_vm2 = vcmask 64512  }
  0x1a   :  { %131 = vmatpush3.xpose.msra.mxu0 %v42_v1 }
  0x1d   :  { %133 = vmatmul.mubr.f32.vlgmr.msra.gmra.mxu0 %v41_v2 }
  0x20   :  { %v114_v8 = vld [vmem:[%s221_s2] sm:$0xff] }
  0xdd   :  { %v109_v3 = vpop.f32.mrf.mxu0 }
  0xde   :  { %v110_v4 = vadd.f32 1.0, %v109_v3 }
  0xdf   :  { %v134_v5 = vpop.f32.mrf.mxu0 }
  0xe0   :  { %v113_v6 = vmax.f32 %v110_v4, 0.0 }
  0xe2   :  { %v116_v7 = vsel %vm115_vm2, %v113_v6, 0.0 }
  0xe3   :  { %117 = vadd.xlane.f32.xlu0 %v116_v7 }
 0x16c   :  { %v118_v9 = vpop.xlane.xlu0 %117 }
 0x16d   :  { %v119_v10 = vadd.f32 %v118_v9, %v114_v8 }
 0x16f   :  { %121 = vst.msk [vmem:[%s221_s2] sm:$0xff] %vm39_vm0, %v119_v10 }
 0x170   :  { %126 = vsyncpa [#allocation3], 1 }
 0x171   :  { %127 = vsyncpa [#allocation5], 1 }

</bundles_post_ra>
